<compile_context>
chip_gen: v5e
topology: v5e:2x2
jax: 0.10.0
libtpu: 0.0.40
codegen_flags: <defaults>
</compile_context>

<pallas_src>
import jax
import jax.numpy as jnp
from jax.experimental import pallas as pl
from jax.experimental.pallas import tpu as pltpu

D = 5    # feature dim (mean, min, max, std, slope)
L = 5    # latent dim of pt.transforms.Omega(5, 5)
P = 12   # number of prototypes: distribution=[5, 7]

_MAX_TB = 32768  # lanes per batch tile (~10 MiB VMEM with double buffering)


def _cdiv(a, b):
    return (a + b - 1) // b


def _round_up(x, m):
    return _cdiv(x, m) * m


def _pick_tb(b):
    """Batch-tile size in lanes.

    Big tiles amortize the ~0.35us per-grid-step overhead; for large batches
    force >= 2 (even) grid steps so v7x's two TensorCores both get work from
    the 'parallel' grid axis. Capped at 32768 lanes so the double-buffered
    VMEM footprint (~300 * tb bytes) stays well under v7x's scoped limit.
    """
    bp = _round_up(b, 128)
    if bp <= 128:
        return 128
    n_steps = max(2, _cdiv(bp, _MAX_TB))
    if n_steps % 2:
        n_steps += 1
    return _round_up(_cdiv(bp, n_steps), 128)


def gmlvq_kernel(xt_ref, wt_ref, cm2_ref, cn_ref, dist_ref):
    """One lane-dense batch tile (batch lives in the 128-lane axis).

      xt_ref:   (D, TB)  data tile, feature-major
      wt_ref:   (L, D)   Omega^T (resident)
      cm2_ref:  (P, L)   -2 * (components @ Omega)   (resident)
      cn_ref:   (P, 1)   ||components @ Omega||^2    (resident)
      dist_ref: (P, TB)  squared distances, prototype-major
    """
    xt = xt_ref[...]                                              # (D, TB)
    wt = wt_ref[...]                                              # (L, D)

    # x' = Omega^T x for the whole tile.                          [MXU]
    xp = jnp.dot(wt, xt, preferred_element_type=jnp.float32)      # (L, TB)
    # ||x'||^2 per sample (reduce over L=5 sublanes).             [VPU/XLU]
    xsq = jnp.sum(xp * xp, axis=0, keepdims=True)                 # (1, TB)
    # -2 * x'.c' for all prototypes at once (-2 pre-folded).      [MXU]
    cross = jnp.dot(cm2_ref[...], xp,
                    preferred_element_type=jnp.float32)           # (P, TB)
    # ||x' - c'||^2 = ||x'||^2 + ||c'||^2 - 2 x'.c'; clamp tiny negatives
    # from cancellation (true distances are >= 0).
    # NOTE: the remaining two broadcast-adds could also be folded into the
    # cross matmul via an augmented [xp; 1; xsq] operand, but that requires a
    # sublane-dim concatenate and VALU is far from binding here, so we keep
    # the simpler, robust epilogue.
    dist = jnp.maximum(cross + cn_ref[...] + xsq, 0.0)
    dist_ref[...] = dist.astype(dist_ref.dtype)


def gmlvq_forward_pm(data_t, components, omega, labels, *, tb=None,
                     out_dtype=jnp.float32):
    """Preferred zero-transpose contract.

    data_t: (D, B) feature-major input (each feature is one row).
    Returns (distance (P, B) prototype-major, labels (P,)).
    Prototype-major distances feed wtac/argmin directly (argmin over axis 0).
    """
    d, B = data_t.shape
    assert d == D

    # Tiny prototype-side math hoisted out of the kernel (done once in XLA).
    c_proj = jnp.dot(components.astype(jnp.float32),
                     omega.astype(jnp.float32))                    # (P, L)
    c_norm = jnp.sum(c_proj * c_proj, axis=-1, keepdims=True)      # (P, 1)
    c_m2 = (-2.0) * c_proj                                         # (P, L)
    omega_t = omega.T.astype(data_t.dtype)                         # (L, D)

    if tb is None:
        tb = _pick_tb(B)
    else:
        tb = max(128, (tb // 128) * 128)
    n_steps = _cdiv(B, tb)
    Bp = n_steps * tb

    # Pad only the ragged tail (no pad at all if B is a tile multiple).
    x = data_t if Bp == B else jnp.pad(data_t, ((0, 0), (0, Bp - B)))
    # Padded columns produce distance == ||c'||^2; they are sliced off below
    # and must be masked if a batch reduction is ever fused into this kernel.

    dist_pm = pl.pallas_call(
        gmlvq_kernel,
        out_shape=jax.ShapeDtypeStruct((P, Bp), out_dtype),
        grid_spec=pltpu.PrefetchScalarGridSpec(
            num_scalar_prefetch=0,
            grid=(n_steps,),
            in_specs=[
                pl.BlockSpec((D, tb), lambda i: (0, i)),   # batch tile (lanes)
                pl.BlockSpec((L, D), lambda i: (0, 0)),    # Omega^T
                pl.BlockSpec((P, L), lambda i: (0, 0)),    # -2 * projected protos
                pl.BlockSpec((P, 1), lambda i: (0, 0)),    # prototype norms
            ],
            out_specs=pl.BlockSpec((P, tb), lambda i: (0, i)),
        ),
        compiler_params=pltpu.CompilerParams(
            dimension_semantics=("parallel",)),
    )(x, omega_t, c_m2, c_norm)

    if Bp != B:
        dist_pm = dist_pm[:, :B]          # slice before any layout change
    return dist_pm, labels


def gmlvq_forward(data, components, omega, labels, *, tb=None,
                  out_dtype=jnp.float32):
    """Torch-layout compatibility wrapper: data (B, D) -> distance (B, P).

    NOTE: this pays two extra HBM passes (input / output transposes as XLA
    ops). Hot paths should call gmlvq_forward_pm with feature-major data and
    consume prototype-major distances directly.
    """
    dist_pm, lab = gmlvq_forward_pm(data.T, components, omega, labels,
                                    tb=tb, out_dtype=out_dtype)
    return dist_pm.T, lab


def gmlvq_reference(data, components, omega):
    diff = data[:, None, :] - components[None, :, :]           # (B, P, D)
    lat = jnp.einsum("bpd,dl->bpl", diff, omega)                # (B, P, L)
    return jnp.sum(lat * lat, axis=-1)                          # (B, P)


if __name__ == "__main__":
    key = jax.random.PRNGKey(0)
    k_data, k_noise, k_omega = jax.random.split(key, 3)

    B = 8
    # Synthetic features (mean/min/max/std/slope per window would come from
    # preprocess_feature in the original pipeline).
    data = jax.random.normal(k_data, (B, D), dtype=jnp.float32)

    # LabeledComponents(distribution=[5, 7]) with SMCI(noise=0.1)-style init:
    # class mean + small noise prototypes.
    class0_mean = jnp.mean(data[: B // 2], axis=0)
    class1_mean = jnp.mean(data[B // 2:], axis=0)
    base = jnp.concatenate(
        [jnp.tile(class0_mean[None, :], (5, 1)),
         jnp.tile(class1_mean[None, :], (7, 1))], axis=0)          # (12, 5)
    components = base + 0.1 * jax.random.normal(k_noise, (P, D), jnp.float32)
    labels = jnp.concatenate(
        [jnp.zeros(5, jnp.int32), jnp.ones(7, jnp.int32)])         # (12,)

    # Omega(5, 5) with RandomLinearTransformInitializer.
    omega = jax.random.normal(k_omega, (D, L), dtype=jnp.float32)

    ref = gmlvq_reference(data, components, omega)                 # (B, P)

    # Preferred contract: feature-major in, prototype-major out (zero wrapper
    # transposes; in production the feature extractor emits (D, B) directly).
    dist_pm, lab = gmlvq_forward_pm(data.T, components, omega, labels)
    dist_pm = jax.block_until_ready(dist_pm)
    assert dist_pm.shape == (P, B) and lab.shape == (P,)
    assert jnp.allclose(dist_pm, ref.T, atol=1e-4, rtol=1e-4), "pm mismatch"

    # Torch-compatible layout, matching the module forward: (distance (B, P), label).
    dist, lab2 = gmlvq_forward(data, components, omega, labels)
    dist = jax.block_until_ready(dist)
    assert dist.shape == (B, P) and lab2.shape == (P,)
    assert jnp.allclose(dist, ref, atol=1e-4, rtol=1e-4), "mismatch vs reference"

    # TODO(synk): preprocess_feature (pandas CSV windowing) is host-side data
    # prep, not part of the nn.Module forward; it is not ported to Pallas.
    print("KERNEL_OK")
</pallas_src>

<mosaic_0001>
module attributes {stable_mosaic.version = 11 : i64} {
  func.func @gmlvq_kernel(%arg0: i32, %arg1: memref<5x128xf32, #tpu.memory_space<vmem>>, %arg2: memref<5x5xf32, #tpu.memory_space<vmem>>, %arg3: memref<12x5xf32, #tpu.memory_space<vmem>>, %arg4: memref<12x1xf32, #tpu.memory_space<vmem>>, %arg5: memref<12x128xf32, #tpu.memory_space<vmem>>) attributes {dimension_semantics = [#tpu.dimension_semantics<parallel>], iteration_bounds = array<i64: 1>, scalar_prefetch = 0 : i64, scratch_operands = 0 : i64, tpu.core_type = #tpu.core_type<tc>, window_params = [{transform_indices = @transform_0, window_bounds = array<i64: 5, 128>}, {pipeline_mode = #tpu.pipeline_mode<synchronous>, transform_indices = @transform_1, window_bounds = array<i64: 5, 5>}, {pipeline_mode = #tpu.pipeline_mode<synchronous>, transform_indices = @transform_2, window_bounds = array<i64: 12, 5>}, {pipeline_mode = #tpu.pipeline_mode<synchronous>, transform_indices = @transform_3, window_bounds = array<i64: 12, 1>}, {transform_indices = @transform_4, window_bounds = array<i64: 12, 128>}]} {
    %c0 = arith.constant 0 : index
    %c0_0 = arith.constant 0 : index
    %0 = vector.load %arg1[%c0, %c0_0] : memref<5x128xf32, #tpu.memory_space<vmem>>, vector<5x128xf32>
    %c0_1 = arith.constant 0 : index
    %c0_2 = arith.constant 0 : index
    %1 = vector.load %arg2[%c0_1, %c0_2] : memref<5x5xf32, #tpu.memory_space<vmem>>, vector<5x5xf32>
    %cst = arith.constant dense<0.000000e+00> : vector<5x128xf32>
    %2 = tpu.matmul %1, %0, %cst {dimension_numbers = #tpu.dot_dimension_numbers<[1], [0], [0], [1], [0, 0, 1, 1], [], []>} : vector<5x5xf32>, vector<5x128xf32>, vector<5x128xf32> -> vector<5x128xf32>
    %3 = arith.mulf %2, %2 : vector<5x128xf32>
    %cst_3 = arith.constant dense<0.000000e+00> : vector<128xf32>
    %4 = vector.multi_reduction <add>, %3, %cst_3 [0] : vector<5x128xf32> to vector<128xf32>
    %5 = vector.shape_cast %4 : vector<128xf32> to vector<1x128xf32>
    %c0_4 = arith.constant 0 : index
    %c0_5 = arith.constant 0 : index
    %6 = vector.load %arg3[%c0_4, %c0_5] : memref<12x5xf32, #tpu.memory_space<vmem>>, vector<12x5xf32>
    %cst_6 = arith.constant dense<0.000000e+00> : vector<12x128xf32>
    %7 = tpu.matmul %6, %2, %cst_6 {dimension_numbers = #tpu.dot_dimension_numbers<[1], [0], [0], [1], [0, 0, 1, 1], [], []>} : vector<12x5xf32>, vector<5x128xf32>, vector<12x128xf32> -> vector<12x128xf32>
    %c0_7 = arith.constant 0 : index
    %c0_8 = arith.constant 0 : index
    %8 = vector.load %arg4[%c0_7, %c0_8] : memref<12x1xf32, #tpu.memory_space<vmem>>, vector<12x1xf32>
    %9 = vector.broadcast %8 : vector<12x1xf32> to vector<12x128xf32>
    %10 = arith.addf %7, %9 : vector<12x128xf32>
    %11 = vector.broadcast %5 : vector<1x128xf32> to vector<12x128xf32>
    %12 = arith.addf %10, %11 : vector<12x128xf32>
    %cst_9 = arith.constant 0.000000e+00 : f32
    %13 = vector.broadcast %cst_9 : f32 to vector<12x128xf32>
    %14 = arith.maximumf %12, %13 : vector<12x128xf32>
    %c0_10 = arith.constant 0 : index
    %c0_11 = arith.constant 0 : index
    %15 = vector.load %arg5[%c0_10, %c0_11] : memref<12x128xf32, #tpu.memory_space<vmem>>, vector<12x128xf32>
    tpu.vector_store %arg5[%c0_10, %c0_11], %14 {strides = array<i32>} : memref<12x128xf32, #tpu.memory_space<vmem>>, vector<12x128xf32>,
    return
  }
  func.func @transform_0(%arg0: i32) -> (i32, i32) {
    %c0_i32 = arith.constant 0 : i32
    %c0_i32_0 = arith.constant 0 : i32
    return %c0_i32, %arg0 : i32, i32
  }
  func.func @transform_1(%arg0: i32) -> (i32, i32) {
    %c0_i32 = arith.constant 0 : i32
    %c0_i32_0 = arith.constant 0 : i32
    %c0_i32_1 = arith.constant 0 : i32
    return %c0_i32, %c0_i32_0 : i32, i32
  }
  func.func @transform_2(%arg0: i32) -> (i32, i32) {
    %c0_i32 = arith.constant 0 : i32
    %c0_i32_0 = arith.constant 0 : i32
    %c0_i32_1 = arith.constant 0 : i32
    return %c0_i32, %c0_i32_0 : i32, i32
  }
  func.func @transform_3(%arg0: i32) -> (i32, i32) {
    %c0_i32 = arith.constant 0 : i32
    %c0_i32_0 = arith.constant 0 : i32
    %c0_i32_1 = arith.constant 0 : i32
    return %c0_i32, %c0_i32_0 : i32, i32
  }
  func.func @transform_4(%arg0: i32) -> (i32, i32) {
    %c0_i32 = arith.constant 0 : i32
    %c0_i32_0 = arith.constant 0 : i32
    return %c0_i32, %arg0 : i32, i32
  }
}

</mosaic_0001>

<bundles_post_ra>
// kernel: tpu_custom_call.1
= control target key start
LH: loop header
LB: loop body
LE: loop exit
PB: predicated region body
PF: predicated region fallthrough
CT: control target
= control target key end

     0   :  { %vm24_vm0 = vcmask 1044480   ;;  %vm20_vm1 = vcmask 39936   ;;  %s220_s0 = inlined_call_operand.vmem [shape: f32[5,128], index: 0, kind: input, shape index: {}]   ;;  %s221_s1 = inlined_call_operand.vmem [shape: f32[5,5], index: 1, kind: input, shape index: {}]   ;;  %s222_s2 = inlined_call_operand.vmem [shape: f32[12,5], index: 2, kind: input, shape index: {}]   ;;  %s223_s3 = inlined_call_operand.vmem [shape: f32[12,1], index: 3, kind: input, shape index: {}]   ;;  %s224_s4 = inlined_call_operand.hbm [shape: f32[12,128], index: 4, kind: output, shape index: {}]  }
   0x1   :  { %v18_v0 = vld [vmem:[%s220_s0] sm:$0x1f] }
   0x2   :  { %v19_v1 = vld [vmem:[%s221_s1] sm:$0x1f]  ;;  %126 = vmatpush.msk.msra.mxu0 %vm24_vm0, %v18_v0 }
   0x3   :  { %9 = vsyncpa [#allocation3], 0  ;;  %127 = vmatmul.msk.f32.vlgmr.msra.gmra.mxu0 %vm20_vm1, %v19_v1  ;;  %v163_v2 = vmov 0   ;;  %v58_v3 = vld [vmem:[%s223_s3] sm:$0xff]  ;;  %v59_v4 = vld [vmem:[%s223_s3 + $0x8] sm:$0xf] }
   0x4   :  { %136 = vset.pattern.permute.xlu0 %v163_v2  ;;  %v56_v5 = vld [vmem:[%s222_s2] sm:$0xff]  ;;  %v57_v6 = vld [vmem:[%s222_s2 + $0x8] sm:$0xf]  ;;  %s164_s2 = smov [#allocation2]   ;;  %s114_s27 = sshll.u32 %s224_s4, 4  ;;  %s115_s27 = int_to_ptr.hbm [resolvable:$true] %s114_s27 }
   0x5   :  { %62 = vperm.xlu0 %136, %v58_v3   ;;  %s112_s3 = sshll.u32 %s164_s2, 4  ;;  %s165_s28 = smov 128   ;;  %s113_s3 = int_to_ptr.vmem [resolvable:$true] %s112_s3 }
   0x6   :  { %s166_s29 = smov 8  }
   0xd   :  { %67 = vperm.xlu0 %136, %v59_v4  }
  0x77   :  { %v63_v14 = vpop.permute.xlu0 %62 }
  0x7f   :  { %v68_v21 = vpop.permute.xlu0 %67 }
  0x80   :  { %v45_v7 = vpop.f32.mrf.mxu0 }
  0x81   :  { %128 = vmatpush.msk.msra.mxu1 %vm24_vm0, %v45_v7  ;;  %131 = vmatpush.msk.msra.mxu2 %vm24_vm0, %v45_v7  ;;  %v48_v8 = vmul.f32 %v45_v7, %v45_v7 }
  0x82   :  { %129 = vmatmul.msk.f32.vlgmr.msra.gmra.mxu1 %vm20_vm1, %v56_v5  ;;  %130 = vmatmul.msk.f32.vlgmr.msra.gmra.mxu2 %vm20_vm1, %v57_v6 }
  0x83   :  { %v49_v9 = vsel %vm24_vm0, %v48_v8, 0.0 }
  0x84   :  { %v50_v10 = vrot.slane %v49_v9, 4 }
  0x86   :  { %v51_v11 = vadd.f32 %v50_v10, %v49_v9 }
  0x88   :  { %v52_v12 = vrot.slane %v51_v11, 2 }
  0x8a   :  { %v53_v13 = vadd.f32 %v52_v12, %v51_v11 }
  0x8c   :  { %v54_v15 = vrot.slane %v53_v13, 1 }
  0x8e   :  { %v55_v17 = vadd.f32 %v54_v15, %v53_v13 }
  0xff   :  { %v96_v16 = vpop.f32.mrf.mxu1 }
 0x100   :  { %v97_v18 = vadd.f32 %v96_v16, %v63_v14 }
 0x102   :  { %v102_v19 = vadd.f32 %v97_v18, %v55_v17 }
 0x104   :  { %v104_v20 = vmax.f32 %v102_v19, 0.0 }
 0x105   :  { %v99_v22 = vpop.f32.mrf.mxu2 }
 0x106   :  { %106 = vst [vmem:[#allocation2] sm:$0xff] %v104_v20  ;;  %v100_v23 = vadd.f32 %v99_v22, %v68_v21 }
 0x108   :  { %v103_v24 = vadd.f32 %v100_v23, %v55_v17 }
 0x10a   :  { %v105_v25 = vmax.f32 %v103_v24, 0.0 }
 0x10c   :  { %107 = vst [vmem:[#allocation2 + $0x8] sm:$0xf] %v105_v25 }
 0x10d   :  { %120 = dma.vmem_to_hbm [thread:$0]  %s113_s3, 256, %s115_s27, [#allocation3], %s165_s28, %s165_s28, %s166_s29  }
 0x10e   :  { %161 = dma.done.wait [#allocation3], 256  }
 0x10f   :  { %162 = vsyncadd [#allocation3], 4294967040 }
 0x110   :  { %125 = vsyncpa [#allocation3], 1 }

</bundles_post_ra>
